<compile_context>
chip_gen: v7x
topology: tpu7x:2x2x1
jax: 0.10.0
libtpu: 0.0.40
codegen_flags: <defaults>
</compile_context>

<pallas_src>
import math
import jax
import jax.numpy as jnp
from jax.experimental import pallas as pl
from jax.experimental.pallas import tpu as pltpu

TIMESTEPS = 100
DATA_DIM = 2
TEMB_DIM = 32
HIDDEN = 128
T_PAD = 128       # time-embedding table rows padded to a full MXU tile
TILE_N = 2048     # rows per grid step; activations/buffers stay far under VMEM


# ----------------------------------------------------------------------------
# Variance schedule (mirrors __init__ of the PyTorch module) — plain JAX glue.
# ----------------------------------------------------------------------------
def cosine_schedule(T, s=0.008, beta_max=0.999):
    t = jnp.arange(T + 1, dtype=jnp.float32)
    f = jnp.cos(((t / T) + s) / (1.0 + s) * (math.pi / 2.0)) ** 2
    alphas_bar = f / f[0]
    betas = 1.0 - alphas_bar[1:] / alphas_bar[:-1]
    return jnp.clip(betas, 1e-8, beta_max)


def make_schedule_buffers(T=TIMESTEPS):
    betas = cosine_schedule(T)
    alphas = 1.0 - betas
    alphas_cumprod = jnp.cumprod(alphas, axis=-1)
    return dict(
        betas=betas,
        alphas=alphas,
        alphas_cumprod=alphas_cumprod,
        sqrt_alphas_cumprod=jnp.sqrt(alphas_cumprod),
        sqrt_one_minus_alphas_cumprod=jnp.sqrt(1.0 - alphas_cumprod),
        sqrt_alphas=jnp.sqrt(alphas),
    )


# ----------------------------------------------------------------------------
# Sinusoidal time embedding (used once, to build the fused timestep table).
# ----------------------------------------------------------------------------
def sinusoidal_embedding(t, dim=TEMB_DIM):
    t = t.astype(jnp.float32)
    half = dim // 2
    freqs = jnp.exp(-math.log(10000.0) * jnp.arange(half, dtype=jnp.float32) / half)
    args = t[:, None] * freqs[None, :]
    return jnp.concatenate([jnp.sin(args), jnp.cos(args)], axis=-1)  # (N, dim)


# ----------------------------------------------------------------------------
# Pallas kernel: fused 3-layer MLP on one (tile, 2) row block.
#   temb_h = onehot(t) @ table          # table = temb@Wt + bt, VMEM-resident
#   h      = relu(x @ W1 + b1 + temb_h)
#   h      = relu(h @ W2 + b2)
#   out    = h @ W3 + b3                # narrow (tile, 2) store
# Weights/biases/table stay VMEM-resident across all grid steps (block (0,0)).
# ----------------------------------------------------------------------------
def _mlp_kernel(x_ref, t_ref, w1_ref, b1_ref, tbl_ref, w2_ref, b2_ref,
                w3_ref, b3_ref, out_ref):
    tile = x_ref.shape[0]

    # Per-row gather of the precomputed (temb @ Wt + bt) row via a one-hot
    # matmul: the compare runs on the VPU, the gather rides the idle MXU.
    onehot = (jax.lax.broadcasted_iota(jnp.int32, (tile, T_PAD), 1)
              == t_ref[...]).astype(jnp.float32)                     # (tile, 128)
    temb_h = jnp.dot(onehot, tbl_ref[...],
                     preferred_element_type=jnp.float32)             # (tile, 128)

    # Layer 1: tiny K=2 matmul (Mosaic pads K internally; MXU has slack).
    h = jnp.dot(x_ref[...], w1_ref[...],
                preferred_element_type=jnp.float32) + b1_ref[...] + temb_h
    h = jnp.maximum(h, 0.0)

    # TODO(synk): bf16 matmul operands (f32 accumulation, f32 elementwise) would
    # halve weight bytes and hit the v6e/v7x MXU native rate; second-order now
    # that HBM traffic is input-dominated, and it would loosen the f32 check.
    h = jnp.dot(h, w2_ref[...], preferred_element_type=jnp.float32) + b2_ref[...]
    h = jnp.maximum(h, 0.0)

    # Narrow store: 8 B of real data per row, no 128-wide zero padding.
    out_ref[...] = jnp.dot(h, w3_ref[...],
                           preferred_element_type=jnp.float32) + b3_ref[...]


def _round_up(n, m):
    return ((n + m - 1) // m) * m


def pack_params(params):
    """One-time fold: timestep table = sinusoidal(t) @ Wt + bt, padded to 128 rows."""
    temb_all = sinusoidal_embedding(jnp.arange(TIMESTEPS, dtype=jnp.int32))   # (100, 32)
    tbl = temb_all @ params["wt"] + params["bt"]                              # (100, 128)
    tbl = jnp.pad(tbl, ((0, T_PAD - TIMESTEPS), (0, 0)))                      # (128, 128)
    return (params["w1"], params["b1"], tbl,
            params["w2"], params["b2"], params["w3"], params["b3"])


def diffusion_forward(x, t, packed):
    """Equivalent of Diffusion.forward(x, t) == model(x, t): predicted noise."""
    w1, b1, tbl, w2, b2, w3, b3 = packed
    N = x.shape[0]
    x = x.astype(jnp.float32)
    t = t.astype(jnp.int32).reshape(-1, 1)

    # Pad rows to a multiple of 8 sublanes only (no whole-tile rounding).
    n8 = _round_up(max(N, 8), 8)
    if n8 != N:
        x = jnp.pad(x, ((0, n8 - N), (0, 0)))
        t = jnp.pad(t, ((0, n8 - N), (0, 0)))

    # Row tile: big to amortize per-step overhead; when all rows fit in one
    # tile, split into >=2 grid steps so v7x can use both TensorCores.
    if n8 <= TILE_N:
        tile = max(8, _round_up(pl.cdiv(n8, 2), 8))
    else:
        tile = TILE_N
    grid = (pl.cdiv(n8, tile),)     # Pallas masks the partial last block.

    row = lambda shape: pl.BlockSpec(shape, lambda i: (i, 0))
    pinned = lambda shape: pl.BlockSpec(shape, lambda i: (0, 0))

    out = pl.pallas_call(
        _mlp_kernel,
        out_shape=jax.ShapeDtypeStruct((n8, DATA_DIM), jnp.float32),
        grid=grid,
        in_specs=[
            row((tile, DATA_DIM)),            # x   (8 B/row)
            row((tile, 1)),                   # t   (4 B/row)
            pinned((DATA_DIM, HIDDEN)),       # W1
            pinned((1, HIDDEN)),              # b1
            pinned((T_PAD, HIDDEN)),          # temb table (temb@Wt + bt)
            pinned((HIDDEN, HIDDEN)),         # W2
            pinned((1, HIDDEN)),              # b2
            pinned((HIDDEN, DATA_DIM)),       # W3
            pinned((1, DATA_DIM)),            # b3
        ],
        out_specs=row((tile, DATA_DIM)),
        compiler_params=pltpu.CompilerParams(
            dimension_semantics=("parallel",)),
    )(x, t, w1, b1, tbl, w2, b2, w3, b3)

    return out[:N]


# ----------------------------------------------------------------------------
# Deterministic parameter init (PyTorch-Linear-style uniform bounds).
# ----------------------------------------------------------------------------
def init_params(key):
    def linear(key, fan_in, fan_out):
        kw, kb = jax.random.split(key)
        bound = 1.0 / math.sqrt(fan_in)
        w = jax.random.uniform(kw, (fan_in, fan_out), jnp.float32, -bound, bound)
        b = jax.random.uniform(kb, (1, fan_out), jnp.float32, -bound, bound)
        return w, b

    k1, k2, k3, k4 = jax.random.split(key, 4)
    w1, b1 = linear(k1, DATA_DIM, HIDDEN)
    wt, bt = linear(k2, TEMB_DIM, HIDDEN)
    w2, b2 = linear(k3, HIDDEN, HIDDEN)
    w3, b3 = linear(k4, HIDDEN, DATA_DIM)
    return dict(w1=w1, b1=b1, wt=wt, bt=bt, w2=w2, b2=b2, w3=w3, b3=b3)


# Pure-JAX reference for correctness check of the kernel.
def _ref_forward(x, t, p):
    temb = sinusoidal_embedding(t, TEMB_DIM)
    h = jnp.maximum(x @ p["w1"] + p["b1"] + temb @ p["wt"] + p["bt"], 0.0)
    h = jnp.maximum(h @ p["w2"] + p["b2"], 0.0)
    return h @ p["w3"] + p["b3"]


if __name__ == "__main__":
    key = jax.random.PRNGKey(0)
    kx, kt, kp = jax.random.split(key, 3)

    N = 8  # small batch of 2-D points
    x = jax.random.normal(kx, (N, DATA_DIM), dtype=jnp.float32)
    t = jax.random.randint(kt, (N,), 0, TIMESTEPS, dtype=jnp.int32)
    params = init_params(kp)
    packed = pack_params(params)   # one-time weight/table packing

    # Buffers from __init__ (betas / alphas / cumprods) — computed, unused by forward.
    _sched = make_schedule_buffers(TIMESTEPS)
    # TODO(synk): sample_q / sample_p / generate are host-side stochastic sampling
    # loops; the 100-step denoise should eventually be one pallas_call with weights
    # + schedule resident in VMEM/SMEM scratch — not part of forward(), left out.

    fwd = jax.jit(lambda x_, t_: diffusion_forward(x_, t_, packed))
    eps_pred = jax.block_until_ready(fwd(x, t))

    ref = _ref_forward(x, t, params)
    assert eps_pred.shape == (N, DATA_DIM)
    assert jnp.allclose(eps_pred, ref, atol=1e-4, rtol=1e-4)

    print("KERNEL_OK")
</pallas_src>

<mosaic_0001>
module attributes {stable_mosaic.version = 11 : i64} {
  func.func @_mlp_kernel(%arg0: i32, %arg1: memref<8x2xf32, #tpu.memory_space<vmem>>, %arg2: memref<8x1xi32, #tpu.memory_space<vmem>>, %arg3: memref<2x128xf32, #tpu.memory_space<vmem>>, %arg4: memref<1x128xf32, #tpu.memory_space<vmem>>, %arg5: memref<128x128xf32, #tpu.memory_space<vmem>>, %arg6: memref<128x128xf32, #tpu.memory_space<vmem>>, %arg7: memref<1x128xf32, #tpu.memory_space<vmem>>, %arg8: memref<128x2xf32, #tpu.memory_space<vmem>>, %arg9: memref<1x2xf32, #tpu.memory_space<vmem>>, %arg10: memref<8x2xf32, #tpu.memory_space<vmem>>) attributes {dimension_semantics = [#tpu.dimension_semantics<parallel>], iteration_bounds = array<i64: 1>, scalar_prefetch = 0 : i64, scratch_operands = 0 : i64, tpu.core_type = #tpu.core_type<tc>, window_params = [{transform_indices = @transform_0, window_bounds = array<i64: 8, 2>}, {transform_indices = @transform_1, window_bounds = array<i64: 8, 1>}, {pipeline_mode = #tpu.pipeline_mode<synchronous>, transform_indices = @transform_2, window_bounds = array<i64: 2, 128>}, {pipeline_mode = #tpu.pipeline_mode<synchronous>, transform_indices = @transform_3, window_bounds = array<i64: 1, 128>}, {pipeline_mode = #tpu.pipeline_mode<synchronous>, transform_indices = @transform_4, window_bounds = array<i64: 128, 128>}, {pipeline_mode = #tpu.pipeline_mode<synchronous>, transform_indices = @transform_5, window_bounds = array<i64: 128, 128>}, {pipeline_mode = #tpu.pipeline_mode<synchronous>, transform_indices = @transform_6, window_bounds = array<i64: 1, 128>}, {pipeline_mode = #tpu.pipeline_mode<synchronous>, transform_indices = @transform_7, window_bounds = array<i64: 128, 2>}, {pipeline_mode = #tpu.pipeline_mode<synchronous>, transform_indices = @transform_8, window_bounds = array<i64: 1, 2>}, {transform_indices = @transform_9, window_bounds = array<i64: 8, 2>}]} {
    %0 = tpu.iota {dimensions = array<i32: 1>} : vector<8x128xi32>
    %c0 = arith.constant 0 : index
    %c0_0 = arith.constant 0 : index
    %1 = vector.load %arg2[%c0, %c0_0] : memref<8x1xi32, #tpu.memory_space<vmem>>, vector<8x1xi32>
    %2 = vector.broadcast %1 : vector<8x1xi32> to vector<8x128xi32>
    %3 = arith.cmpi eq, %0, %2 : vector<8x128xi32>
    %4 = arith.extui %3 : vector<8x128xi1> to vector<8x128xi32>
    %5 = arith.sitofp %4 : vector<8x128xi32> to vector<8x128xf32>
    %c0_1 = arith.constant 0 : index
    %c0_2 = arith.constant 0 : index
    %6 = vector.load %arg5[%c0_1, %c0_2] : memref<128x128xf32, #tpu.memory_space<vmem>>, vector<128x128xf32>
    %cst = arith.constant dense<0.000000e+00> : vector<8x128xf32>
    %7 = tpu.matmul %5, %6, %cst {dimension_numbers = #tpu.dot_dimension_numbers<[1], [0], [0], [1], [0, 0, 1, 1], [], []>} : vector<8x128xf32>, vector<128x128xf32>, vector<8x128xf32> -> vector<8x128xf32>
    %c0_3 = arith.constant 0 : index
    %c0_4 = arith.constant 0 : index
    %8 = vector.load %arg1[%c0_3, %c0_4] : memref<8x2xf32, #tpu.memory_space<vmem>>, vector<8x2xf32>
    %c0_5 = arith.constant 0 : index
    %c0_6 = arith.constant 0 : index
    %9 = vector.load %arg3[%c0_5, %c0_6] : memref<2x128xf32, #tpu.memory_space<vmem>>, vector<2x128xf32>
    %cst_7 = arith.constant dense<0.000000e+00> : vector<8x128xf32>
    %10 = tpu.matmul %8, %9, %cst_7 {dimension_numbers = #tpu.dot_dimension_numbers<[1], [0], [0], [1], [0, 0, 1, 1], [], []>} : vector<8x2xf32>, vector<2x128xf32>, vector<8x128xf32> -> vector<8x128xf32>
    %c0_8 = arith.constant 0 : index
    %c0_9 = arith.constant 0 : index
    %11 = vector.load %arg4[%c0_8, %c0_9] : memref<1x128xf32, #tpu.memory_space<vmem>>, vector<1x128xf32>
    %12 = vector.broadcast %11 : vector<1x128xf32> to vector<8x128xf32>
    %13 = arith.addf %10, %12 : vector<8x128xf32>
    %14 = arith.addf %13, %7 : vector<8x128xf32>
    %cst_10 = arith.constant 0.000000e+00 : f32
    %15 = vector.broadcast %cst_10 : f32 to vector<8x128xf32>
    %16 = arith.maximumf %14, %15 : vector<8x128xf32>
    %c0_11 = arith.constant 0 : index
    %c0_12 = arith.constant 0 : index
    %17 = vector.load %arg6[%c0_11, %c0_12] : memref<128x128xf32, #tpu.memory_space<vmem>>, vector<128x128xf32>
    %cst_13 = arith.constant dense<0.000000e+00> : vector<8x128xf32>
    %18 = tpu.matmul %16, %17, %cst_13 {dimension_numbers = #tpu.dot_dimension_numbers<[1], [0], [0], [1], [0, 0, 1, 1], [], []>} : vector<8x128xf32>, vector<128x128xf32>, vector<8x128xf32> -> vector<8x128xf32>
    %c0_14 = arith.constant 0 : index
    %c0_15 = arith.constant 0 : index
    %19 = vector.load %arg7[%c0_14, %c0_15] : memref<1x128xf32, #tpu.memory_space<vmem>>, vector<1x128xf32>
    %20 = vector.broadcast %19 : vector<1x128xf32> to vector<8x128xf32>
    %21 = arith.addf %18, %20 : vector<8x128xf32>
    %cst_16 = arith.constant 0.000000e+00 : f32
    %22 = vector.broadcast %cst_16 : f32 to vector<8x128xf32>
    %23 = arith.maximumf %21, %22 : vector<8x128xf32>
    %c0_17 = arith.constant 0 : index
    %c0_18 = arith.constant 0 : index
    %24 = vector.load %arg8[%c0_17, %c0_18] : memref<128x2xf32, #tpu.memory_space<vmem>>, vector<128x2xf32>
    %cst_19 = arith.constant dense<0.000000e+00> : vector<8x2xf32>
    %25 = tpu.matmul %23, %24, %cst_19 {dimension_numbers = #tpu.dot_dimension_numbers<[1], [0], [0], [1], [0, 0, 1, 1], [], []>} : vector<8x128xf32>, vector<128x2xf32>, vector<8x2xf32> -> vector<8x2xf32>
    %c0_20 = arith.constant 0 : index
    %c0_21 = arith.constant 0 : index
    %26 = vector.load %arg9[%c0_20, %c0_21] : memref<1x2xf32, #tpu.memory_space<vmem>>, vector<1x2xf32>
    %27 = vector.broadcast %26 : vector<1x2xf32> to vector<8x2xf32>
    %28 = arith.addf %25, %27 : vector<8x2xf32>
    %c0_22 = arith.constant 0 : index
    %c0_23 = arith.constant 0 : index
    %29 = vector.load %arg10[%c0_22, %c0_23] : memref<8x2xf32, #tpu.memory_space<vmem>>, vector<8x2xf32>
    tpu.vector_store %arg10[%c0_22, %c0_23], %28 {strides = array<i32>} : memref<8x2xf32, #tpu.memory_space<vmem>>, vector<8x2xf32>,
    return
  }
  func.func @transform_0(%arg0: i32) -> (i32, i32) {
    %c0_i32 = arith.constant 0 : i32
    %c0_i32_0 = arith.constant 0 : i32
    return %arg0, %c0_i32 : i32, i32
  }
  func.func @transform_1(%arg0: i32) -> (i32, i32) {
    %c0_i32 = arith.constant 0 : i32
    %c0_i32_0 = arith.constant 0 : i32
    return %arg0, %c0_i32 : i32, i32
  }
  func.func @transform_2(%arg0: i32) -> (i32, i32) {
    %c0_i32 = arith.constant 0 : i32
    %c0_i32_0 = arith.constant 0 : i32
    %c0_i32_1 = arith.constant 0 : i32
    return %c0_i32, %c0_i32_0 : i32, i32
  }
  func.func @transform_3(%arg0: i32) -> (i32, i32) {
    %c0_i32 = arith.constant 0 : i32
    %c0_i32_0 = arith.constant 0 : i32
    %c0_i32_1 = arith.constant 0 : i32
    return %c0_i32, %c0_i32_0 : i32, i32
  }
  func.func @transform_4(%arg0: i32) -> (i32, i32) {
    %c0_i32 = arith.constant 0 : i32
    %c0_i32_0 = arith.constant 0 : i32
    %c0_i32_1 = arith.constant 0 : i32
    return %c0_i32, %c0_i32_0 : i32, i32
  }
  func.func @transform_5(%arg0: i32) -> (i32, i32) {
    %c0_i32 = arith.constant 0 : i32
    %c0_i32_0 = arith.constant 0 : i32
    %c0_i32_1 = arith.constant 0 : i32
    return %c0_i32, %c0_i32_0 : i32, i32
  }
  func.func @transform_6(%arg0: i32) -> (i32, i32) {
    %c0_i32 = arith.constant 0 : i32
    %c0_i32_0 = arith.constant 0 : i32
    %c0_i32_1 = arith.constant 0 : i32
    return %c0_i32, %c0_i32_0 : i32, i32
  }
  func.func @transform_7(%arg0: i32) -> (i32, i32) {
    %c0_i32 = arith.constant 0 : i32
    %c0_i32_0 = arith.constant 0 : i32
    %c0_i32_1 = arith.constant 0 : i32
    return %c0_i32, %c0_i32_0 : i32, i32
  }
  func.func @transform_8(%arg0: i32) -> (i32, i32) {
    %c0_i32 = arith.constant 0 : i32
    %c0_i32_0 = arith.constant 0 : i32
    %c0_i32_1 = arith.constant 0 : i32
    return %c0_i32, %c0_i32_0 : i32, i32
  }
  func.func @transform_9(%arg0: i32) -> (i32, i32) {
    %c0_i32 = arith.constant 0 : i32
    %c0_i32_0 = arith.constant 0 : i32
    return %arg0, %c0_i32 : i32, i32
  }
}

</mosaic_0001>

<bundles_post_ra>
// kernel: _lambda_.1
= control target key start
LH: loop header
LB: loop body
LE: loop exit
PB: predicated region body
PF: predicated region fallthrough
CT: control target
= control target key end

     0   :  { %14 = vsyncpa [#allocation3], 0  ;;  %s945_s0 = inlined_call_operand.vmem [shape: f32[8,2], index: 0, kind: input, shape index: {}]   ;;  %s946_s1 = inlined_call_operand.vmem [shape: s32[8,1], index: 1, kind: input, shape index: {}]   ;;  %s947_s2 = inlined_call_operand.vmem [shape: f32[2,128], index: 2, kind: input, shape index: {}]   ;;  %s948_s3 = inlined_call_operand.vmem [shape: f32[1,128], index: 3, kind: input, shape index: {}]   ;;  %s949_s4 = inlined_call_operand.hbm [shape: f32[128,128], index: 4, kind: input, shape index: {}]   ;;  %s950_s5 = inlined_call_operand.hbm [shape: f32[128,128], index: 5, kind: input, shape index: {}]   ;;  %s951_s6 = inlined_call_operand.vmem [shape: f32[1,128], index: 6, kind: input, shape index: {}]   ;;  %s952_s7 = inlined_call_operand.hbm [shape: f32[128,2], index: 7, kind: input, shape index: {}]   ;;  %s953_s8 = inlined_call_operand.vmem [shape: f32[1,2], index: 8, kind: input, shape index: {}]   ;;  %s954_s9 = inlined_call_operand.vmem [shape: f32[8,2], index: 9, kind: output, shape index: {}]  }
   0x1   :  { %15 = vsyncpa [#allocation5], 0  ;;  %s777_s30 = smov [#allocation4]   ;;  %s778_s11 = smov [#allocation2]  }
   0x2   :  { %s41_s10 = sshll.u32 %s777_s30, 4  ;;  %s29_s12 = sshll.u32 %s778_s11, 4  ;;  %s42_s10 = int_to_ptr.vmem [resolvable:$true] %s41_s10  ;;  %s837_s12 = int_to_ptr.vmem [resolvable:$true] %s29_s12 }
   0x3   :  { %s707_s15 = scalar_lea.hbm %s950_s5, 2048 }
   0x4   :  { %p708_p0 = scmp.ne.s32.totalorder %s950_s5, %s707_s15  ;;  %p711_p1 = scmp.lt.u32.totalorder %s707_s15, %s950_s5 }
   0x6   :  { %p713_p2 = pnand %p711_p1, %p708_p0 }
   0x8   :  { %716 = shalt.err (!%p713_p2)
}
   0x9   :  { %s717_s20 = scalar_lea.vmem %s42_s10, 2048  ;;  %p722_p4 = scmp.lt.s32.totalorder %s42_s10, %s42_s10 }
   0xa   :  { %p718_p3 = scmp.ne.s32.totalorder %s42_s10, %s717_s20  ;;  %p723_p5 = scmp.lt.s32.totalorder %s717_s20, %s717_s20 }
   0xc   :  { %p724_p6 = por %p723_p5, %p722_p4 }
   0xe   :  { %p725_p7 = pnand %p724_p6, %p718_p3 }
  0x10   :  { %728 = shalt.err (!%p725_p7)
}
  0x11   :  { %s779_s21 = smov 128   ;;  %s780_s22 = smov 8  }
  0x12   :  { %47 = dma.hbm_to_vmem [thread:$0]  %s950_s5, 2048, %s42_s10, [#allocation5], %s779_s21, %s779_s21, %s780_s22  }
  0x13   :  { %s729_s27 = scalar_lea.hbm %s949_s4, 2048 }
  0x14   :  { %p730_p8 = scmp.ne.s32.totalorder %s949_s4, %s729_s27  ;;  %p733_p9 = scmp.lt.u32.totalorder %s729_s27, %s949_s4 }
  0x16   :  { %p735_p10 = pnand %p733_p9, %p730_p8 }
  0x18   :  { %738 = shalt.err (!%p735_p10)
}
  0x19   :  { %s739_s13 = scalar_lea.vmem %s837_s12, 2048  ;;  %p744_p12 = scmp.lt.s32.totalorder %s837_s12, %s837_s12 }
  0x1a   :  { %p740_p11 = scmp.ne.s32.totalorder %s837_s12, %s739_s13  ;;  %p745_p13 = scmp.lt.s32.totalorder %s739_s13, %s739_s13 }
  0x1c   :  { %p746_p0 = por %p745_p13, %p744_p12 }
  0x1e   :  { %p747_p1 = pnand %p746_p0, %p740_p11 }
  0x20   :  { %750 = shalt.err (!%p747_p1)
}
  0x21   :  { %35 = dma.hbm_to_vmem [thread:$0]  %s949_s4, 2048, %s837_s12, [#allocation3], %s779_s21, %s779_s21, %s780_s22  }
  0x22   :  { %s781_s14 = smov [#allocation6]   ;;  %s751_s18 = scalar_lea.hbm %s952_s7, 2048 }
  0x23   :  { %s55_s15 = sshll.u32 %s781_s14, 4  ;;  %p752_p2 = scmp.ne.s32.totalorder %s952_s7, %s751_s18  ;;  %s56_s15 = int_to_ptr.vmem [resolvable:$true] %s55_s15 }
  0x24   :  { %p755_p3 = scmp.lt.u32.totalorder %s751_s18, %s952_s7 }
  0x26   :  { %p757_p4 = pnand %p755_p3, %p752_p2 }
  0x28   :  { %760 = shalt.err (!%p757_p4)
}
  0x29   :  { %s761_s25 = scalar_lea.vmem %s56_s15, 2048  ;;  %p766_p6 = scmp.lt.s32.totalorder %s56_s15, %s56_s15 }
  0x2a   :  { %p762_p5 = scmp.ne.s32.totalorder %s56_s15, %s761_s25  ;;  %p767_p7 = scmp.lt.s32.totalorder %s761_s25, %s761_s25 }
  0x2c   :  { %p768_p8 = por %p767_p7, %p766_p6 }
  0x2e   :  { %p769_p9 = pnand %p768_p8, %p762_p5 }
  0x30   :  { %772 = shalt.err (!%p769_p9)
}
  0x31   :  { %61 = dma.hbm_to_vmem [thread:$0]  %s952_s7, 2048, %s56_s15, [#allocation5], %s779_s21, %s779_s21, %s780_s22  }
  0x32   :  { %773 = dma.done.wait [#allocation3], 2048  }
  0x33   :  { %774 = vsyncadd [#allocation3], 4294965248 }
  0x34   :  { %775 = dma.done.wait [#allocation5], 4096  }
  0x35   :  { %776 = vsyncadd [#allocation5], 4294963200  ;;  %v782_v0 = vmov 0   ;;  %v783_v1 = vmov 0.0|0.0   ;;  %v75_v2 = vld [vmem:[%s946_s1] sm:$0xff]  ;;  %v83_v4 = vld [vmem:[#allocation2 + $0x8] sm:$0xff]  ;;  %v73_v49 = vlaneseq }
  0x36   :  { %706 = vset.pattern.permute.xlu0 %v782_v0  ;;  %621 = vmatprep.subr.bf16.mxu0 %v783_v1  ;;  %v82_v3 = vld [vmem:[#allocation2] sm:$0xff]  ;;  %v84_v6 = vld [vmem:[#allocation2 + $0x10] sm:$0xff]  ;;  %v85_v7 = vld [vmem:[#allocation2 + $0x18] sm:$0xff]  ;;  %vm784_vm0 = vmmov 0   ;;  %v785_v8 = vmov 0.0   ;;  %vm181_vm1 = vcmask 1041408  }
  0x37   :  { %645 = vmatprep.subr.bf16.mxu1 %v783_v1  ;;  %77 = vperm.xlu0 %706, %v75_v2   ;;  %v622_v5 = vpack.c.bf16 %v83_v4, %v82_v3  ;;  %v625_v9 = vpack.c.bf16 %v85_v7, %v84_v6  ;;  %v86_v10 = vld [vmem:[#allocation2 + $0x20] sm:$0xff]  ;;  %v87_v11 = vld [vmem:[#allocation2 + $0x28] sm:$0xff]  ;;  %v88_v13 = vld [vmem:[#allocation2 + $0x30] sm:$0xff]  ;;  %v74_v50 = vand.u32 127, %v73_v49  ;;  %v786_v53 = vmov 1.0  }
  0x38   :  { %543 = vmatprep.mubr.msk.f32.mxu0 %vm784_vm0, %v785_v8  ;;  %583 = vmatprep.mubr.msk.f32.mxu1 %vm784_vm0, %v785_v8  ;;  %v628_v12 = vpack.c.bf16 %v87_v11, %v86_v10  ;;  %v89_v14 = vld [vmem:[#allocation2 + $0x38] sm:$0xff]  ;;  %v257_v15 = vld [vmem:[#allocation4] sm:$0xff]  ;;  %v258_v16 = vld [vmem:[#allocation4 + $0x8] sm:$0xff]  ;;  %vm177_vm3 = vcmask 15360  }
  0x39   :  { %623 = vmatpush3.bf16.msra.mxu0 %v622_v5  ;;  %v259_v17 = vld [vmem:[#allocation4 + $0x10] sm:$0xff]  ;;  %v631_v18 = vpack.c.bf16 %v89_v14, %v88_v13  ;;  %v646_v19 = vpack.c.bf16 %v258_v16, %v257_v15  ;;  %v260_v20 = vld [vmem:[#allocation4 + $0x18] sm:$0xff]  ;;  %v90_v21 = vld [vmem:[#allocation2 + $0x40] sm:$0xff] }
  0x3a   :  { %624 = vmatprep.subr.bf16.mxu0 %v783_v1  ;;  %v91_v22 = vld [vmem:[#allocation2 + $0x48] sm:$0xff]  ;;  %v649_v23 = vpack.c.bf16 %v260_v20, %v259_v17  ;;  %v261_v24 = vld [vmem:[#allocation4 + $0x20] sm:$0xff]  ;;  %v92_v27 = vld [vmem:[#allocation2 + $0x50] sm:$0xff] }
  0x3b   :  { %647 = vmatpush3.bf16.msra.mxu1 %v646_v19  ;;  %v262_v25 = vld [vmem:[#allocation4 + $0x28] sm:$0xff]  ;;  %v634_v26 = vpack.c.bf16 %v91_v22, %v90_v21  ;;  %v93_v28 = vld [vmem:[#allocation2 + $0x58] sm:$0xff]  ;;  %v263_v30 = vld [vmem:[#allocation4 + $0x30] sm:$0xff] }
  0x3c   :  { %648 = vmatprep.subr.bf16.mxu1 %v783_v1  ;;  %v652_v29 = vpack.c.bf16 %v262_v25, %v261_v24  ;;  %v264_v31 = vld [vmem:[#allocation4 + $0x38] sm:$0xff]  ;;  %v637_v32 = vpack.c.bf16 %v93_v28, %v92_v27  ;;  %v94_v33 = vld [vmem:[#allocation2 + $0x60] sm:$0xff]  ;;  %v95_v34 = vld [vmem:[#allocation2 + $0x68] sm:$0xff] }
  0x3d   :  { %626 = vmatpush3.bf16.msra.mxu0 %v625_v9  ;;  %v655_v35 = vpack.c.bf16 %v264_v31, %v263_v30  ;;  %v265_v36 = vld [vmem:[#allocation4 + $0x40] sm:$0xff]  ;;  %v266_v37 = vld [vmem:[#allocation4 + $0x48] sm:$0xff]  ;;  %v640_v38 = vpack.c.bf16 %v95_v34, %v94_v33  ;;  %v96_v39 = vld [vmem:[#allocation2 + $0x70] sm:$0xff] }
  0x3e   :  { %627 = vmatprep.subr.bf16.mxu0 %v783_v1  ;;  %v97_v40 = vld [vmem:[#allocation2 + $0x78] sm:$0xff]  ;;  %v658_v41 = vpack.c.bf16 %v266_v37, %v265_v36  ;;  %v267_v42 = vld [vmem:[#allocation4 + $0x50] sm:$0xff]  ;;  %v269_v46 = vld [vmem:[#allocation4 + $0x60] sm:$0xff] }
  0x3f   :  { %650 = vmatpush3.bf16.msra.mxu1 %v649_v23  ;;  %v268_v43 = vld [vmem:[#allocation4 + $0x58] sm:$0xff]  ;;  %v643_v44 = vpack.c.bf16 %v97_v40, %v96_v39  ;;  %v270_v47 = vld [vmem:[#allocation4 + $0x68] sm:$0xff]  ;;  %v169_v52 = vld [vmem:[%s947_s2] sm:$0x3] }
  0x40   :  { %651 = vmatprep.subr.bf16.mxu1 %v783_v1  ;;  %v661_v45 = vpack.c.bf16 %v268_v43, %v267_v42  ;;  %v664_v48 = vpack.c.bf16 %v270_v47, %v269_v46  ;;  %v168_v54 = vld [vmem:[%s945_s0] sm:$0xff]  ;;  %v271_v55 = vld [vmem:[#allocation4 + $0x70] sm:$0xff]  ;;  %v272_v56 = vld [vmem:[#allocation4 + $0x78] sm:$0xff] }
  0x41   :  { %629 = vmatpush3.bf16.msra.mxu0 %v628_v12  ;;  %v667_v57 = vpack.c.bf16 %v272_v56, %v271_v55  ;;  %v453_v58 = vld [vmem:[%s948_s3] ss:$0 sm:$0xff]  ;;  %v352_v60 = vld [vmem:[#allocation6 + $0x8] sm:$0xff]  ;;  %v353_v3 = vld [vmem:[#allocation6 + $0x10] sm:$0xff] }
  0x42   :  { %630 = vmatprep.subr.bf16.mxu0 %v783_v1  ;;  %v351_v59 = vld [vmem:[#allocation6] sm:$0xff]  ;;  %v354_v4 = vld [vmem:[#allocation6 + $0x18] sm:$0xff]  ;;  %v356_v7 = vld [vmem:[#allocation6 + $0x28] sm:$0xff] }
  0x43   :  { %653 = vmatpush3.bf16.msra.mxu1 %v652_v29  ;;  %v670_v0 = vpack.c.bf16 %v352_v60, %v351_v59  ;;  %v673_v5 = vpack.c.bf16 %v354_v4, %v353_v3  ;;  %v355_v6 = vld [vmem:[#allocation6 + $0x20] sm:$0xff]  ;;  %v357_v10 = vld [vmem:[#allocation6 + $0x30] sm:$0xff]  ;;  %v358_v11 = vld [vmem:[#allocation6 + $0x38] sm:$0xff] }
  0x44   :  { %654 = vmatprep.subr.bf16.mxu1 %v783_v1  ;;  %v676_v9 = vpack.c.bf16 %v356_v7, %v355_v6  ;;  %v679_v12 = vpack.c.bf16 %v358_v11, %v357_v10  ;;  %v359_v13 = vld [vmem:[#allocation6 + $0x40] sm:$0xff]  ;;  %v360_v14 = vld [vmem:[#allocation6 + $0x48] sm:$0xff]  ;;  %v362_v16 = vld [vmem:[#allocation6 + $0x58] sm:$0xff] }
  0x45   :  { %632 = vmatpush3.bf16.msra.mxu0 %v631_v18  ;;  %v682_v15 = vpack.c.bf16 %v360_v14, %v359_v13  ;;  %v363_v18 = vld [vmem:[#allocation6 + $0x60] sm:$0xff]  ;;  %v364_v19 = vld [vmem:[#allocation6 + $0x68] sm:$0xff]  ;;  %v365_v21 = vld [vmem:[#allocation6 + $0x70] sm:$0xff] }
  0x46   :  { %633 = vmatprep.subr.bf16.mxu0 %v783_v1  ;;  %v688_v20 = vpack.c.bf16 %v364_v19, %v363_v18  ;;  %v366_v22 = vld [vmem:[#allocation6 + $0x78] sm:$0xff]  ;;  %v456_v24 = vld [vmem:[%s951_s6] ss:$0 sm:$0xff] }
  0x47   :  { %656 = vmatpush3.bf16.msra.mxu1 %v655_v35  ;;  %v691_v23 = vpack.c.bf16 %v366_v22, %v365_v21  ;;  %v457_v29 = vld [vmem:[%s953_s8] ss:$0 sm:$0xff] }
  0x48   :  { %657 = vmatprep.subr.bf16.mxu1 %v783_v1 }
  0x49   :  { %635 = vmatpush3.bf16.msra.mxu0 %v634_v26 }
  0x4a   :  { %636 = vmatprep.subr.bf16.mxu0 %v783_v1 }
  0x4b   :  { %659 = vmatpush3.bf16.msra.mxu1 %v658_v41 }
  0x4c   :  { %660 = vmatprep.subr.bf16.mxu1 %v783_v1 }
  0x4d   :  { %638 = vmatpush3.bf16.msra.mxu0 %v637_v32 }
  0x4e   :  { %639 = vmatprep.subr.bf16.mxu0 %v783_v1 }
  0x4f   :  { %662 = vmatpush3.bf16.msra.mxu1 %v661_v45 }
  0x50   :  { %663 = vmatprep.subr.bf16.mxu1 %v783_v1 }
  0x51   :  { %641 = vmatpush3.bf16.msra.mxu0 %v640_v38 }
  0x52   :  { %642 = vmatprep.subr.bf16.mxu0 %v783_v1 }
  0x53   :  { %665 = vmatpush3.bf16.msra.mxu1 %v664_v48 }
  0x54   :  { %666 = vmatprep.subr.bf16.mxu1 %v783_v1 }
  0x55   :  { %644 = vmatpush3.bf16.msra.mxu0 %v643_v44 }
  0x56   :  { %546 = vmatprep.subr.mxu0 %v785_v8 }
  0x57   :  { %668 = vmatpush3.bf16.msra.mxu1 %v667_v57 }
  0x58   :  { %669 = vmatprep.subr.bf16.mxu1 %v783_v1 }
  0xb6   :  { %v78_v51 = vpop.permute.xlu0 %77 }
  0xb7   :  { %vm79_vm2 = vcmp.eq.s32.totalorder %v74_v50, %v78_v51 }
  0xb8   :  { %544 = vmatmul.mubr.msk.f32.vlgmr.msra.gmra.mrb[0].mxu0 %vm79_vm2, %v786_v53 }
  0xb9   :  { %547 = vmatpush3.msk.msra.mxu0 %vm181_vm1, %v169_v52  ;;  %548 = vmatprep.mubr.msk.f32.mxu0 %vm784_vm0, %v785_v8 }
  0xc0   :  { %549 = vmatmul.mubr.msk.f32.vlgmr.msra.gmra.mrb[0].mxu0 %vm177_vm3, %v168_v54 }
 0x193   :  { %v251_v61 = vpop.f32.mrb[0].mxu0 }
 0x194   :  { %v252_v62 = vadd.f32 %v453_v58, %v251_v61  ;;  %v550_v63 = vpop.f32.mrb[1].mxu0 }
 0x196   :  { %v256_v2 = vmax.f32 %v252_v62, 0.0 }
 0x198   :  { %584 = vmatmul.mubr.f32.vlgmr.msra.gmra.mrb[0].mxu1 %v256_v2 }
 0x199   :  { %671 = vmatpush3.bf16.msra.mxu1 %v670_v0  ;;  %618 = vmatprep.mubr.msk.f32.mxu1 %vm784_vm0, %v785_v8  ;;  %v361_v8 = vld [vmem:[#allocation6 + $0x50] sm:$0xff] }
 0x19a   :  { %672 = vmatprep.subr.bf16.mxu1 %v783_v1  ;;  %v685_v17 = vpack.c.bf16 %v362_v16, %v361_v8 }
 0x19d   :  { %674 = vmatpush3.bf16.msra.mxu1 %v673_v5 }
 0x19e   :  { %675 = vmatprep.subr.bf16.mxu1 %v783_v1 }
 0x1a1   :  { %677 = vmatpush3.bf16.msra.mxu1 %v676_v9 }
 0x1a2   :  { %678 = vmatprep.subr.bf16.mxu1 %v783_v1 }
 0x1a5   :  { %680 = vmatpush3.bf16.msra.mxu1 %v679_v12 }
 0x1a6   :  { %681 = vmatprep.subr.bf16.mxu1 %v783_v1 }
 0x1a9   :  { %683 = vmatpush3.bf16.msra.mxu1 %v682_v15 }
 0x1aa   :  { %684 = vmatprep.subr.bf16.mxu1 %v783_v1 }
 0x1ad   :  { %686 = vmatpush3.bf16.msra.mxu1 %v685_v17 }
 0x1ae   :  { %687 = vmatprep.subr.bf16.mxu1 %v783_v1 }
 0x1b1   :  { %689 = vmatpush3.bf16.msra.mxu1 %v688_v20 }
 0x1b2   :  { %690 = vmatprep.subr.bf16.mxu1 %v783_v1 }
 0x1b5   :  { %692 = vmatpush3.bf16.msra.mxu1 %v691_v23 }
 0x26b   :  { %v346_v25 = vpop.f32.mrb[0].mxu1 }
 0x26c   :  { %v347_v26 = vadd.f32 %v456_v24, %v346_v25  ;;  %v585_v27 = vpop.f32.mrb[1].mxu1 }
 0x26e   :  { %v350_v28 = vmax.f32 %v347_v26, 0.0 }
 0x270   :  { %619 = vmatmul.mubr.f32.vlgmr.msra.gmra.mrb[2].mxu1 %v350_v28 }
 0x343   :  { %v440_v30 = vpop.f32.mrb[2].mxu1 }
 0x344   :  { %v441_v31 = vadd.f32 %v457_v29, %v440_v30  ;;  %v620_v1 = vpop.f32.mrb[3].mxu1 }
 0x346   :  { %444 = vst.msk [vmem:[%s954_s9] sm:$0xff] %vm177_vm3, %v441_v31 }
 0x347   :  { %449 = vsyncpa [#allocation3], 1 }
 0x348   :  { %450 = vsyncpa [#allocation5], 1 }

</bundles_post_ra>
